<compile_context>
chip_gen: v6e
topology: v6e:2x2x1
jax: 0.10.0
libtpu: 0.0.40
codegen_flags: <defaults>
</compile_context>

<pallas_src>
import functools
from typing import NamedTuple, Optional

import numpy as np
import jax
import jax.numpy as jnp
from jax import lax
from jax.experimental import pallas as pl
from jax.experimental.pallas import tpu as pltpu

_LANES = 128
_SENTINEL = 1.0e30  # |c|^2 sentinel for padded points: forces d2 >> threshold^2.


def _graph_smoothing_kernel(lhs_ref, rhs_ref, xr_ref, xrow_ref, out_ref, *,
                            threshold: float, normalize: bool):
    lhs = lhs_ref[...]     # (Bg, N, D+2)   [-sqrt(2)c_i, |c_i|^2, 1]
    rhs = rhs_ref[...]     # (Bg, D+2, N)   [sqrt(2)c_j ; 1 ; |c_j|^2]
    xr = xr_ref[...]       # (Bg, N, 8)     col0 = x, col1 = 1, rest 0

    # Pairwise squared distances in a single MXU pass (augmented Gram):
    #   d2[i,j] = |c_i|^2 + |c_j|^2 - 2 c_i . c_j
    # Padded rows/cols carry the 1e30 sentinel in the |c|^2 slot, so they fail
    # the threshold test without any explicit mask operand.
    d2 = jnp.einsum('gik,gkj->gij', lhs, rhs,
                    preferred_element_type=jnp.float32)        # (Bg, N, N)

    thr2 = jnp.float32(threshold * threshold)
    # Adjacency WITH self-loops kept on valid rows (d2[i,i] ~ 0 <= thr^2);
    # padded rows and columns are exactly zero -> adj is symmetric.
    adj = jnp.where(d2 <= thr2, 1.0, 0.0)                      # (Bg, N, N)

    x_col = xr[:, :, 0:1]                                      # (Bg, N, 1)

    if normalize:
        x_row = xrow_ref[...]                                  # (Bg, 1, N)
        # True degree (self-loop removed); adj is symmetric so the row/col
        # reductions carry the same values.  Padded rows get deg=-1 -> isq=0.
        deg_col = jnp.sum(adj, axis=2, keepdims=True) - 1.0    # (Bg, N, 1)
        deg_row = jnp.sum(adj, axis=1, keepdims=True) - 1.0    # (Bg, 1, N)
        isq_col = jnp.where(deg_col > 0.0, lax.rsqrt(deg_col), 0.0)
        isq_row = jnp.where(deg_row > 0.0, lax.rsqrt(deg_row), 0.0)
        xs_col = isq_col * x_col
        xs_row = isq_row * x_row
        # xs^T A' xs via a VPU outer-product reduction (no skinny MXU matvec).
        quad_a = jnp.sum(adj * xs_col * xs_row)
        # x^T (I - D^{-1/2} A D^{-1/2}) x; the +sum(xs^2) term removes the
        # self-loops kept on adj's diagonal.
        quad = jnp.sum(x_col * x_col) - quad_a + jnp.sum(xs_col * xs_col)
    else:
        # One fused MXU pass over adj: col 0 -> A'x, col 1 -> deg_self = deg+1.
        m = jnp.einsum('gij,gjc->gic', adj, xr,
                       preferred_element_type=jnp.float32)     # (Bg, N, 8)
        ax_self = m[:, :, 0:1]
        deg_self = m[:, :, 1:2]
        # Self-loops cancel exactly:
        #   sum(deg' x^2) - x^T A' x == sum(deg x^2) - x^T A x = x^T (D - A) x.
        quad = jnp.sum(deg_self * x_col * x_col) - jnp.sum(x_col * ax_self)

    # Lane-dense, unmasked writeback of the per-step partial loss (sum over Bg).
    out_ref[...] = jnp.broadcast_to(quad, out_ref.shape).astype(jnp.float32)


class _Prepared(NamedTuple):
    lhs_aug: jax.Array     # (Gp, N, D+2) f32
    rhs_aug: jax.Array     # (Gp, D+2, N) f32
    gather_idx: jax.Array  # (Gp, N) i32 -- indices into flat x (0 for padding)
    valid: jax.Array       # (Gp, N) bool
    block_groups: int      # Bg  -- groups per grid step
    num_steps: int         # grid size; Gp == num_steps * Bg


def prepare_head_coords(head_coords) -> Optional[_Prepared]:
    """Host-side, once-per-dataset packing of the (static) head coordinates."""
    groups = [np.asarray(c, np.float32) for c in head_coords]
    sizes_all = [int(g.shape[0]) for g in groups]
    keep = [i for i, s in enumerate(sizes_all) if s > 0]
    if not keep:
        return None
    offsets_all = np.concatenate([[0], np.cumsum(sizes_all)]).astype(np.int64)
    G = len(keep)
    D = int(groups[keep[0]].shape[1])
    n_max = max(sizes_all[i] for i in keep)
    N = max(_LANES, ((n_max + _LANES - 1) // _LANES) * _LANES)

    # Groups per grid step: keep the Bg*N^2 f32 slab around ~8 MiB and keep at
    # least 2 grid steps when G >= 2 so v7x's two TensorCores both get work.
    bg_vmem = max(1, (8 * 1024 * 1024 // 4) // (N * N))
    bg = max(1, min(bg_vmem, (G + 1) // 2)) if G >= 2 else 1
    steps = -(-G // bg)
    Gp = steps * bg

    lhs = np.zeros((Gp, N, D + 2), np.float32)
    rhs = np.zeros((Gp, D + 2, N), np.float32)
    # Sentinel defaults: padded rows/cols (and whole dummy groups) get |c|^2=1e30.
    lhs[:, :, D] = _SENTINEL
    lhs[:, :, D + 1] = 1.0
    rhs[:, D, :] = 1.0
    rhs[:, D + 1, :] = _SENTINEL
    gather_idx = np.zeros((Gp, N), np.int32)
    valid = np.zeros((Gp, N), bool)
    sqrt2 = np.float32(np.sqrt(2.0))
    for gi, i in enumerate(keep):
        n = sizes_all[i]
        c = groups[i]
        sq = np.sum(c * c, axis=1, dtype=np.float32)
        lhs[gi, :n, :D] = -sqrt2 * c
        lhs[gi, :n, D] = sq
        rhs[gi, :D, :n] = (sqrt2 * c).T
        rhs[gi, D + 1, :n] = sq
        gather_idx[gi, :n] = offsets_all[i] + np.arange(n)
        valid[gi, :n] = True
    return _Prepared(jnp.asarray(lhs), jnp.asarray(rhs),
                     jnp.asarray(gather_idx), jnp.asarray(valid),
                     int(bg), int(steps))


def graph_smoothing_from_prepared(x, prep: _Prepared, *, threshold=1.0,
                                  normalize_laplacian=True):
    """Forward loss given pre-packed coordinates (forward / inference only)."""
    if isinstance(x, tuple):
        # TODO(synk): sample=True reparameterization path not implemented.
        x = x[0]
    x = jnp.asarray(x, jnp.float32).reshape(-1)
    # Differentiable-in-principle gather of the flat predictions into padded layout;
    # the pallas_call itself is forward-only (see custom_vjp TODO at top).
    xg = jnp.where(prep.valid, jnp.take(x, prep.gather_idx, axis=0), 0.0)  # (Gp, N)
    gp, n = xg.shape
    bg = prep.block_groups
    steps = prep.num_steps
    dp2 = prep.lhs_aug.shape[-1]

    # RHS for the fused deg/Ax matmul: col0 = x, col1 = 1, rest zero (8 lanes).
    xr = jnp.concatenate(
        [xg[..., None], jnp.ones_like(xg)[..., None],
         jnp.zeros(xg.shape + (6,), jnp.float32)], axis=-1)     # (Gp, N, 8)
    x_row = xg[:, None, :]                                       # (Gp, 1, N)

    kernel = functools.partial(_graph_smoothing_kernel,
                               threshold=float(threshold),
                               normalize=bool(normalize_laplacian))

    # VMEM budget from the real live set (~4-5 Bg*N^2 f32 slabs + small inputs),
    # capped at 48 MiB so v7x's 64 MiB physical VMEM keeps headroom.
    n2_bytes = bg * n * n * 4
    vmem_bytes = int(min(48 * 2**20, max(16 * 2**20, 5 * n2_bytes + 2 * 2**20)))

    losses = pl.pallas_call(
        kernel,
        out_shape=jax.ShapeDtypeStruct((steps, 1, _LANES), jnp.float32),
        grid=(steps,),
        in_specs=[
            pl.BlockSpec((bg, n, dp2), lambda s: (s, 0, 0)),
            pl.BlockSpec((bg, dp2, n), lambda s: (s, 0, 0)),
            pl.BlockSpec((bg, n, 8), lambda s: (s, 0, 0)),
            pl.BlockSpec((bg, 1, n), lambda s: (s, 0, 0)),
        ],
        out_specs=pl.BlockSpec((1, 1, _LANES), lambda s: (s, 0, 0)),
        compiler_params=pltpu.CompilerParams(
            dimension_semantics=("parallel",),
            vmem_limit_bytes=vmem_bytes),
    )(prep.lhs_aug, prep.rhs_aug, xr, x_row)

    return jnp.sum(losses[:, 0, 0])


def graph_smoothing(x, head_coords, y_true, *, threshold=1.0,
                    normalize_laplacian=True):
    """JAX/Pallas equivalent of GraphSmoothing.forward (sample=False path)."""
    # TODO(synk): y_true accepted for interface parity; assumed adjacency uses only
    # the coordinates (get_adjacency_threshold_coords source was not provided).
    del y_true
    prep = prepare_head_coords(head_coords)
    if prep is None:
        return jnp.float32(0.0)
    return graph_smoothing_from_prepared(
        x, prep, threshold=threshold, normalize_laplacian=normalize_laplacian)


def _reference(x, head_coords, *, threshold, normalize):
    """Pure-JAX reference with the same assumed adjacency/Laplacian semantics."""
    off = 0
    total = jnp.float32(0.0)
    for c in head_coords:
        n = c.shape[0]
        if n == 0:
            continue
        cx = x[off:off + n].astype(jnp.float32)
        d = jnp.sqrt(jnp.sum((c[:, None, :] - c[None, :, :]) ** 2, axis=-1))
        A = ((d <= threshold) & (~jnp.eye(n, dtype=bool))).astype(jnp.float32)
        deg = A.sum(axis=1)
        if normalize:
            inv = jnp.where(deg > 0, 1.0 / jnp.sqrt(deg), 0.0)
            L = jnp.eye(n, dtype=jnp.float32) - A * inv[:, None] * inv[None, :]
        else:
            L = jnp.diag(deg) - A
        total = total + cx @ L @ cx
        off += n
    return total


if __name__ == "__main__":
    key = jax.random.PRNGKey(0)
    k1, k2, k3 = jax.random.split(key, 3)

    sizes = [5, 7]               # two "images" with 5 and 7 head points
    D = 2
    n_total = sum(sizes)

    coords_all = jax.random.uniform(k1, (n_total, D), minval=0.0, maxval=2.0)
    head_coords = []
    off = 0
    for n in sizes:
        head_coords.append(coords_all[off:off + n])
        off += n

    x = jax.random.normal(k2, (n_total,), dtype=jnp.float32)
    y_true = jax.random.uniform(k3, (n_total, D))

    # Normalized-Laplacian path.
    loss = graph_smoothing(x, head_coords, y_true,
                           threshold=1.0, normalize_laplacian=True)
    loss = jax.block_until_ready(loss)
    ref = _reference(x, head_coords, threshold=1.0, normalize=True)
    np.testing.assert_allclose(np.asarray(loss), np.asarray(ref),
                               rtol=1e-4, atol=1e-4)

    # Unnormalized-Laplacian path.
    loss_u = graph_smoothing(x, head_coords, y_true,
                             threshold=1.0, normalize_laplacian=False)
    loss_u = jax.block_until_ready(loss_u)
    ref_u = _reference(x, head_coords, threshold=1.0, normalize=False)
    np.testing.assert_allclose(np.asarray(loss_u), np.asarray(ref_u),
                               rtol=1e-4, atol=1e-4)

    print("KERNEL_OK")
</pallas_src>

<mosaic_0001>
module attributes {stable_mosaic.version = 11 : i64} {
  func.func @_graph_smoothing_kernel(%arg0: i32, %arg1: memref<1x128x4xf32, #tpu.memory_space<vmem>>, %arg2: memref<1x4x128xf32, #tpu.memory_space<vmem>>, %arg3: memref<1x128x8xf32, #tpu.memory_space<vmem>>, %arg4: memref<1x1x128xf32, #tpu.memory_space<vmem>>, %arg5: memref<1x1x128xf32, #tpu.memory_space<vmem>>) attributes {dimension_semantics = [#tpu.dimension_semantics<parallel>], iteration_bounds = array<i64: 2>, scalar_prefetch = 0 : i64, scratch_operands = 0 : i64, tpu.core_type = #tpu.core_type<tc>, window_params = [{transform_indices = @transform_0, window_bounds = array<i64: 1, 128, 4>}, {transform_indices = @transform_1, window_bounds = array<i64: 1, 4, 128>}, {transform_indices = @transform_2, window_bounds = array<i64: 1, 128, 8>}, {transform_indices = @transform_3, window_bounds = array<i64: 1, 1, 128>}, {transform_indices = @transform_4, window_bounds = array<i64: 1, 1, 128>}]} {
    %c0 = arith.constant 0 : index
    %c0_0 = arith.constant 0 : index
    %c0_1 = arith.constant 0 : index
    %0 = vector.load %arg1[%c0, %c0_0, %c0_1] : memref<1x128x4xf32, #tpu.memory_space<vmem>>, vector<1x128x4xf32>
    %c0_2 = arith.constant 0 : index
    %c0_3 = arith.constant 0 : index
    %c0_4 = arith.constant 0 : index
    %1 = vector.load %arg2[%c0_2, %c0_3, %c0_4] : memref<1x4x128xf32, #tpu.memory_space<vmem>>, vector<1x4x128xf32>
    %c0_5 = arith.constant 0 : index
    %c0_6 = arith.constant 0 : index
    %c0_7 = arith.constant 0 : index
    %2 = vector.load %arg3[%c0_5, %c0_6, %c0_7] : memref<1x128x8xf32, #tpu.memory_space<vmem>>, vector<1x128x8xf32>
    "tpu.trace_start"() <{level = 10 : i32, message = "gik,gkj->gij"}> : () -> ()
    %cst = arith.constant dense<0.000000e+00> : vector<1x128x128xf32>
    %3 = tpu.matmul %0, %1, %cst {dimension_numbers = #tpu.dot_dimension_numbers<[2], [1], [1], [2], [0, 0, 0, 1, 1, 2], [0], [0]>} : vector<1x128x4xf32>, vector<1x4x128xf32>, vector<1x128x128xf32> -> vector<1x128x128xf32>
    %cst_8 = arith.constant 1.000000e+00 : f32
    "tpu.trace_stop"() : () -> ()
    %4 = vector.broadcast %cst_8 : f32 to vector<1x128x128xf32>
    %5 = arith.cmpf ole, %3, %4 : vector<1x128x128xf32>
    %cst_9 = arith.constant 1.000000e+00 : f32
    %cst_10 = arith.constant 0.000000e+00 : f32
    %6 = vector.broadcast %cst_9 : f32 to vector<1x128x128xf32>
    %7 = vector.broadcast %cst_10 : f32 to vector<1x128x128xf32>
    %8 = arith.select %5, %6, %7 : vector<1x128x128xi1>, vector<1x128x128xf32>
    %9 = vector.extract_strided_slice %2 {offsets = [0, 0, 0], sizes = [1, 128, 1], strides = [1, 1, 1]} : vector<1x128x8xf32> to vector<1x128x1xf32>
    %c0_11 = arith.constant 0 : index
    %c0_12 = arith.constant 0 : index
    %c0_13 = arith.constant 0 : index
    %10 = vector.load %arg4[%c0_11, %c0_12, %c0_13] : memref<1x1x128xf32, #tpu.memory_space<vmem>>, vector<1x1x128xf32>
    %cst_14 = arith.constant dense<0.000000e+00> : vector<1x128xf32>
    %11 = vector.multi_reduction <add>, %8, %cst_14 [2] : vector<1x128x128xf32> to vector<1x128xf32>
    %12 = vector.shape_cast %11 : vector<1x128xf32> to vector<1x128x1xf32>
    %cst_15 = arith.constant 1.000000e+00 : f32
    %13 = vector.broadcast %cst_15 : f32 to vector<1x128x1xf32>
    %14 = arith.subf %12, %13 : vector<1x128x1xf32>
    %cst_16 = arith.constant dense<0.000000e+00> : vector<1x128xf32>
    %15 = vector.multi_reduction <add>, %8, %cst_16 [1] : vector<1x128x128xf32> to vector<1x128xf32>
    %16 = vector.shape_cast %15 : vector<1x128xf32> to vector<1x1x128xf32>
    %cst_17 = arith.constant 1.000000e+00 : f32
    %17 = vector.broadcast %cst_17 : f32 to vector<1x1x128xf32>
    %18 = arith.subf %16, %17 : vector<1x1x128xf32>
    %cst_18 = arith.constant 0.000000e+00 : f32
    %19 = vector.broadcast %cst_18 : f32 to vector<1x128x1xf32>
    %20 = arith.cmpf ogt, %14, %19 : vector<1x128x1xf32>
    %21 = math.rsqrt %14 : vector<1x128x1xf32>
    %cst_19 = arith.constant 0.000000e+00 : f32
    %22 = vector.broadcast %cst_19 : f32 to vector<1x128x1xf32>
    %23 = arith.select %20, %21, %22 : vector<1x128x1xi1>, vector<1x128x1xf32>
    %cst_20 = arith.constant 0.000000e+00 : f32
    %24 = vector.broadcast %cst_20 : f32 to vector<1x1x128xf32>
    %25 = arith.cmpf ogt, %18, %24 : vector<1x1x128xf32>
    %26 = math.rsqrt %18 : vector<1x1x128xf32>
    %cst_21 = arith.constant 0.000000e+00 : f32
    %27 = vector.broadcast %cst_21 : f32 to vector<1x1x128xf32>
    %28 = arith.select %25, %26, %27 : vector<1x1x128xi1>, vector<1x1x128xf32>
    %29 = arith.mulf %23, %9 : vector<1x128x1xf32>
    %30 = arith.mulf %28, %10 : vector<1x1x128xf32>
    %31 = vector.broadcast %29 : vector<1x128x1xf32> to vector<1x128x128xf32>
    %32 = arith.mulf %8, %31 : vector<1x128x128xf32>
    %33 = vector.broadcast %30 : vector<1x1x128xf32> to vector<1x128x128xf32>
    %34 = arith.mulf %32, %33 : vector<1x128x128xf32>
    %35 = vector.shape_cast %34 : vector<1x128x128xf32> to vector<1x1x128x128xf32>
    %cst_22 = arith.constant dense<0.000000e+00> : vector<1xf32>
    %36 = vector.multi_reduction <add>, %35, %cst_22 [1, 2, 3] : vector<1x1x128x128xf32> to vector<1xf32>
    %37 = vector.shape_cast %36 : vector<1xf32> to vector<1x1x1x1xf32>
    %38 = vector.extract %37[0, 0, 0, 0] : f32 from vector<1x1x1x1xf32>
    %39 = arith.mulf %9, %9 : vector<1x128x1xf32>
    %40 = vector.shape_cast %39 : vector<1x128x1xf32> to vector<1x1x128x1xf32>
    %cst_23 = arith.constant dense<0.000000e+00> : vector<1xf32>
    %41 = vector.multi_reduction <add>, %40, %cst_23 [1, 2, 3] : vector<1x1x128x1xf32> to vector<1xf32>
    %42 = vector.shape_cast %41 : vector<1xf32> to vector<1x1x1x1xf32>
    %43 = vector.extract %42[0, 0, 0, 0] : f32 from vector<1x1x1x1xf32>
    %44 = arith.subf %43, %38 : f32
    %45 = arith.mulf %29, %29 : vector<1x128x1xf32>
    %46 = vector.shape_cast %45 : vector<1x128x1xf32> to vector<1x1x128x1xf32>
    %cst_24 = arith.constant dense<0.000000e+00> : vector<1xf32>
    %47 = vector.multi_reduction <add>, %46, %cst_24 [1, 2, 3] : vector<1x1x128x1xf32> to vector<1xf32>
    %48 = vector.shape_cast %47 : vector<1xf32> to vector<1x1x1x1xf32>
    %49 = vector.extract %48[0, 0, 0, 0] : f32 from vector<1x1x1x1xf32>
    %50 = arith.addf %44, %49 : f32
    %51 = vector.broadcast %50 : f32 to vector<1x1x128xf32>
    %c0_25 = arith.constant 0 : index
    %c0_26 = arith.constant 0 : index
    %c0_27 = arith.constant 0 : index
    %52 = vector.load %arg5[%c0_25, %c0_26, %c0_27] : memref<1x1x128xf32, #tpu.memory_space<vmem>>, vector<1x1x128xf32>
    tpu.vector_store %arg5[%c0_25, %c0_26, %c0_27], %51 {strides = array<i32>} : memref<1x1x128xf32, #tpu.memory_space<vmem>>, vector<1x1x128xf32>,
    return
  }
  func.func @transform_0(%arg0: i32) -> (i32, i32, i32) {
    %c0_i32 = arith.constant 0 : i32
    %c0_i32_0 = arith.constant 0 : i32
    %c0_i32_1 = arith.constant 0 : i32
    return %arg0, %c0_i32, %c0_i32_0 : i32, i32, i32
  }
  func.func @transform_1(%arg0: i32) -> (i32, i32, i32) {
    %c0_i32 = arith.constant 0 : i32
    %c0_i32_0 = arith.constant 0 : i32
    %c0_i32_1 = arith.constant 0 : i32
    return %arg0, %c0_i32, %c0_i32_0 : i32, i32, i32
  }
  func.func @transform_2(%arg0: i32) -> (i32, i32, i32) {
    %c0_i32 = arith.constant 0 : i32
    %c0_i32_0 = arith.constant 0 : i32
    %c0_i32_1 = arith.constant 0 : i32
    return %arg0, %c0_i32, %c0_i32_0 : i32, i32, i32
  }
  func.func @transform_3(%arg0: i32) -> (i32, i32, i32) {
    %c0_i32 = arith.constant 0 : i32
    %c0_i32_0 = arith.constant 0 : i32
    %c0_i32_1 = arith.constant 0 : i32
    return %arg0, %c0_i32, %c0_i32_0 : i32, i32, i32
  }
  func.func @transform_4(%arg0: i32) -> (i32, i32, i32) {
    %c0_i32 = arith.constant 0 : i32
    %c0_i32_0 = arith.constant 0 : i32
    %c0_i32_1 = arith.constant 0 : i32
    return %arg0, %c0_i32, %c0_i32_0 : i32, i32, i32
  }
}

</mosaic_0001>

<bundles_post_ra>
// kernel: tpu_custom_call.1
= control target key start
LH: loop header
LB: loop body
LE: loop exit
PB: predicated region body
PF: predicated region fallthrough
CT: control target
= control target key end

     0   :  { %9 = vsyncpa [#allocation3], 0  ;;  %s1632_s0 = inlined_call_operand.vmem [shape: f32[2,128,4], index: 0, kind: input, shape index: {}]   ;;  %s1633_s1 = inlined_call_operand.vmem [shape: f32[2,4,128], index: 1, kind: input, shape index: {}]   ;;  %s1634_s2 = inlined_call_operand.vmem [shape: f32[2,128,8], index: 2, kind: input, shape index: {}]   ;;  %s1635_s3 = inlined_call_operand.vmem [shape: f32[2,1,128], index: 3, kind: input, shape index: {}]   ;;  %s1636_s4 = inlined_call_operand.hbm [shape: f32[2,1,128], index: 4, kind: output, shape index: {}]  }
   0x1   :  { %11 = vsyncpa [#allocation3 + $0x1], 0  ;;  %s1272_s15 = smov 0   ;;  %s1274_s16 = smov 0  }
   0x2   :  { %s1276_s17 = smov 0   ;;  %s1278_s18 = smov 0  }
   0x3 LB: > { %s1293_s19 = sadd.s32 4294967295, %s1242_s18   ;;  %s1006_s20 = sadd.s32 4294967294, %s1242_s18   ;;  %s1242_s18 = sphi %s1278_s18, %s1642_s18   ;;  %s1238_s17 = sphi %s1276_s17, %s1641_s17   ;;  %s1234_s16 = sphi %s1274_s16, %s1640_s16   ;;  %s1230_s15 = sphi %s1272_s15, %s1639_s15  }
   0x4   : > { %s1297_s21 = sadd.s32 1, %s1242_s18   ;;  %s128_s22 = sadd.s32 1, %s1238_s17 }
   0x5   : > { %s125_s23 = ssub.s32 %s1242_s18, %s1297_s21  ;;  %p138_p0 = scmp.ne.s32.totalorder %s1238_s17, %s1234_s16 }
   0x6   : > { %p126_p1 = scmp.eq.s32.totalorder %s125_s23, 0  ;;  %p139_p2 = scmp.eq.s32.totalorder %s1293_s19, 1 }
   0x7   : > { %p144_p3 = scmp.ne.s32.totalorder %s1234_s16, %s1230_s15  ;;  %p145_p4 = scmp.eq.s32.totalorder %s1006_s20, 1 }
   0x8   : > { %s1308_s24 = scalar_select %p126_p1, %s1238_s17, %s128_s22  }
   0x9   : > { %p1310_p5 = por %p139_p2, %p138_p0  ;;  %p1314_p6 = por %p145_p4, %p144_p3 }
   0xa   : > { %p1009_p7 = scmp.ge.s32.totalorder %s1242_s18, 1  ;;  %p192_p8 = scmp.lt.s32.totalorder %s1242_s18, 3 }
   0xc   : > { %p193_p9 = pnand %p1009_p7, %p192_p8 }
   0xd   : > { %p229_p10 = scmp.lt.s32.totalorder (!%p193_p9), %s1293_s19, 1  ;;  %s227_s22 = sand.u32 (!%p193_p9), 1, %s1234_s16  }
   0xe   : > { %196 = sbr.rel (%p193_p9) target bundleno = 775 (0x307), region = 36  ;;  %s228_s30 = scalar_lea.vmem (!%p193_p9), [#allocation2], %s227_s22 }
   0xf   : > { %s918_s5 = sshll.u32 (!%p193_p9), %s228_s30, 4  ;;  %s906_s11 = scalar_lea.sflag (!%p193_p9), [#allocation3], %s227_s22  ;;  %s919_s5 = int_to_ptr.vmem [resolvable:$true] %s918_s5 }
  0x13   : > { %s1322_s27 = scalar_select %p229_p10, %s1293_s19, 1  ;;  %vm328_vm0 = vcmask 1043456   ;;  %vm279_vm1 = vcmask 31744   ;;  %v1244_v20 = vmov 0.0   ;;  %v1245_v49 = vmov 0  }
  0x14   : > { %1146 = vset.pattern.permute.xlu0 %v1245_v49  ;;  %1147 = vset.pattern.permute.xlu1 %v1245_v49 }
  0x15   : > { %s1052_s28 = sshll.u32 %s1322_s27, 7  ;;  %s1012_s29 = sshll.u32 %s1322_s27, 2 }
  0x16   : > { %s1331_s6 = scalar_lea.vmem %s1632_s0, %s1052_s28  ;;  %s237_s9 = scalar_lea.vmem %s1633_s1, %s1012_s29 }
  0x17   : > { %v262_v0 = vld [vmem:[%s237_s9] sm:$0xf]  ;;  %v247_v2 = vld [vmem:[%s1331_s6 + $0x8] sm:$0xff]  ;;  %v248_v3 = vld [vmem:[%s1331_s6 + $0x10] sm:$0xff]  ;;  %s1423_s12 = scalar_lea.vmem %s1634_s2, %s1052_s28  ;;  %s245_s20 = scalar_lea.vmem %s1635_s3, %s1322_s27 }
  0x18   : > { %v246_v1 = vld [vmem:[%s1331_s6] sm:$0xff]  ;;  %1071 = vmatprep.subr.msk.mxu0 %vm328_vm0, %v262_v0  ;;  %1097 = vmatprep.subr.msk.mxu1 %vm328_vm0, %v262_v0  ;;  %v255_v5 = vld [vmem:[%s1331_s6 + $0x48] sm:$0xff]  ;;  %v249_v6 = vld [vmem:[%s1331_s6 + $0x18] sm:$0xff]  ;;  %s1049_s28 = sshll.u32 %s1293_s19, 4  ;;  %s1246_s19 = smov [#allocation2]  }
  0x19   : > { %1073 = vmatprep.mubr.msk.f32.mxu0 %vm279_vm1, %v246_v1  ;;  %1072 = vmatpush3.msk.msra.mxu0 %vm328_vm0, %v262_v0  ;;  %v254_v4 = vld [vmem:[%s1331_s6 + $0x40] sm:$0xff]  ;;  %v256_v7 = vld [vmem:[%s1331_s6 + $0x50] sm:$0xff]  ;;  %v257_v9 = vld [vmem:[%s1331_s6 + $0x58] sm:$0xff]  ;;  %s1597_s10 = scalar_lea.hbm %s1636_s4, %s1049_s28  ;;  %s1186_s13 = sshll.u32 %s1246_s19, 4  ;;  %s1187_s13 = int_to_ptr.vmem [resolvable:$false] %s1186_s13 }
  0x1a   : > { %1074 = vmatmul.mubr.msk.f32.vlgmr.msra.gmra.mxu0 %vm279_vm1, %v247_v2  ;;  %1098 = vmatpush3.msk.msra.mxu1 %vm328_vm0, %v262_v0  ;;  %v250_v8 = vld [vmem:[%s1331_s6 + $0x20] sm:$0xff]  ;;  %v251_v11 = vld [vmem:[%s1331_s6 + $0x28] sm:$0xff]  ;;  %v252_v12 = vld [vmem:[%s1331_s6 + $0x30] sm:$0xff]  ;;  %s1188_s14 = scalar_lea.vmem %s1187_s13, 32  ;;  %p1189_p0 = scmp.lt.s32.totalorder %s919_s5, %s1187_s13 }
  0x1b   : > { %1076 = vmatprep.mubr.msk.f32.mxu0 %vm279_vm1, %v248_v3  ;;  %1085 = vmatprep.mubr.msk.f32.mxu1 %vm279_vm1, %v254_v4  ;;  %v258_v10 = vld [vmem:[%s1331_s6 + $0x60] sm:$0xff]  ;;  %v259_v13 = vld [vmem:[%s1331_s6 + $0x68] sm:$0xff]  ;;  %v260_v14 = vld [vmem:[%s1331_s6 + $0x70] sm:$0xff] }
  0x1c   : > { %1086 = vmatmul.mubr.msk.f32.vlgmr.msra.gmra.mxu1 %vm279_vm1, %v255_v5  ;;  %v253_v15 = vld [vmem:[%s1331_s6 + $0x38] sm:$0xff]  ;;  %v263_v0 = vld [vmem:[%s1423_s12] sm:$0xff]  ;;  %v264_v1 = vld [vmem:[%s1423_s12 + $0x8] sm:$0xff] }
  0x1d   : > { %1088 = vmatprep.mubr.msk.f32.mxu1 %vm279_vm1, %v256_v7  ;;  %v261_v16 = vld [vmem:[%s1331_s6 + $0x78] sm:$0xff]  ;;  %v788_v4 = vmul.f32 %v263_v0, %v263_v0  ;;  %v789_v5 = vmul.f32 %v264_v1, %v264_v1 }
  0x1e   : > { %1077 = vmatmul.mubr.msk.f32.gmra.mxu0 %vm279_vm1, %v249_v6 }
  0x1f   : > { %1079 = vmatprep.mubr.msk.f32.mxu0 %vm279_vm1, %v250_v8 }
  0x20   : > { %1089 = vmatmul.mubr.msk.f32.gmra.mxu1 %vm279_vm1, %v257_v9 }
  0x21   : > { %1091 = vmatprep.mubr.msk.f32.mxu1 %vm279_vm1, %v258_v10 }
  0x22   : > { %1080 = vmatmul.mubr.msk.f32.gmra.mxu0 %vm279_vm1, %v251_v11  ;;  %v265_v11 = vld [vmem:[%s1423_s12 + $0x10] sm:$0xff] }
  0x23   : > { %1082 = vmatprep.mubr.msk.f32.mxu0 %vm279_vm1, %v252_v12  ;;  %v790_v12 = vmul.f32 %v265_v11, %v265_v11 }
  0x24   : > { %1092 = vmatmul.mubr.msk.f32.gmra.mxu1 %vm279_vm1, %v259_v13 }
  0x25   : > { %1094 = vmatprep.mubr.msk.f32.mxu1 %vm279_vm1, %v260_v14 }
  0x26   : > { %1083 = vmatmul.mubr.msk.f32.gmra.mxu0 %vm279_vm1, %v253_v15 }
  0x28   : > { %1095 = vmatmul.mubr.msk.f32.gmra.mxu1 %vm279_vm1, %v261_v16 }
  0xda   : > { %v1075_v17 = vpop.f32.mrf.mxu0 }
  0xdb   : > { %vm478_vm3 = vcmp.le.f32.partialorder %v1075_v17, 1.0 }
  0xdc   : > { %v398_v18 = vpop.f32.mrf.mxu0  ;;  %v1087_v19 = vpop.f32.mrf.mxu1  ;;  %v1371_v26 = vsel %vm478_vm3, 1.0, %v1244_v20  ;;  %vm804_vm3 = vcmask 7168  }
  0xdd   : > { %vm477_vm2 = vcmp.le.f32.partialorder %v398_v18, 1.0  ;;  %vm486_vm12 = vcmp.le.f32.partialorder %v1087_v19, 1.0  ;;  %v805_v15 = vsel %vm804_vm3, %v788_v4, 0.0  ;;  %v806_v16 = vsel %vm804_vm3, %v789_v5, 0.0 }
  0xde   : > { %v1368_v21 = vsel %vm477_vm2, 1.0, %v1244_v20  ;;  %v1078_v22 = vpop.f32.mrf.mxu0  ;;  %v438_v23 = vpop.f32.mrf.mxu1  ;;  %v1397_v43 = vsel %vm486_vm12, 1.0, %v1244_v20 }
  0xdf   : > { %510 = vadd.xlane.f32.xlu0 %v1368_v21  ;;  %vm480_vm5 = vcmp.le.f32.partialorder %v1078_v22, 1.0  ;;  %vm485_vm9 = vcmp.le.f32.partialorder %v438_v23, 1.0 }
  0xe0   : > { %v408_v24 = vpop.f32.mrf.mxu0  ;;  %v1090_v25 = vpop.f32.mrf.mxu1  ;;  %v1377_v31 = vsel %vm480_vm5, 1.0, %v1244_v20  ;;  %v1389_v39 = vsel %vm485_vm9, 1.0, %v1244_v20 }
  0xe1   : > { %vm479_vm4 = vcmp.le.f32.partialorder %v408_v24, 1.0  ;;  %vm488_vm14 = vcmp.le.f32.partialorder %v1090_v25, 1.0  ;;  %v266_v24 = vld [vmem:[%s1423_s12 + $0x18] sm:$0xff]  ;;  %v807_v25 = vadd.f32 %v806_v16, %v805_v15  ;;  %v269_v15 = vld [vmem:[%s1423_s12 + $0x30] sm:$0xff] }
  0xe2   : > { %v1373_v27 = vsel %vm479_vm4, 1.0, %v1244_v20  ;;  %v1081_v28 = vpop.f32.mrf.mxu0  ;;  %v448_v29 = vpop.f32.mrf.mxu1  ;;  %v1403_v46 = vsel %vm488_vm14, 1.0, %v1244_v20 }
  0xe3   : > { %512 = vadd.xlane.f32.xlu0 %v1371_v26  ;;  %514 = vadd.xlane.f32.xlu1 %v1373_v27  ;;  %vm482_vm7 = vcmp.le.f32.partialorder %v1081_v28, 1.0  ;;  %vm487_vm11 = vcmp.le.f32.partialorder %v448_v29, 1.0  ;;  %v791_v28 = vmul.f32 %v266_v24, %v266_v24  ;;  %v808_v29 = vsel %vm804_vm3, %v790_v12, 0.0 }
  0xe4   : > { %v418_v30 = vpop.f32.mrf.mxu0  ;;  %v1093_v34 = vpop.f32.mrf.mxu1  ;;  %v1383_v36 = vsel %vm482_vm7, 1.0, %v1244_v20  ;;  %v1395_v42 = vsel %vm487_vm11, 1.0, %v1244_v20 }
  0xe5   : > { %vm481_vm6 = vcmp.le.f32.partialorder %v418_v30, 1.0  ;;  %vm490_vm0 = vcmp.le.f32.partialorder %v1093_v34, 1.0 }
  0xe6   : > { %v1379_v32 = vsel %vm481_vm6, 1.0, %v1244_v20  ;;  %v1084_v33 = vpop.f32.mrf.mxu0  ;;  %v458_v38 = vpop.f32.mrf.mxu1  ;;  %v1409_v48 = vsel %vm490_vm0, 1.0, %v1244_v20 }
  0xe7   : > { %516 = vadd.xlane.f32.xlu1 %v1377_v31  ;;  %518 = vadd.xlane.f32.xlu0 %v1379_v32  ;;  %vm484_vm10 = vcmp.le.f32.partialorder %v1084_v33, 1.0  ;;  %vm489_vm13 = vcmp.le.f32.partialorder %v458_v38, 1.0 }
  0xe8   : > { %v428_v35 = vpop.f32.mrf.mxu0  ;;  %v1391_v40 = vsel %vm484_vm10, 1.0, %v1244_v20  ;;  %v1096_v41 = vpop.f32.mrf.mxu1  ;;  %v1401_v45 = vsel %vm489_vm13, 1.0, %v1244_v20 }
  0xe9   : > { %vm483_vm8 = vcmp.le.f32.partialorder %v428_v35, 1.0  ;;  %vm492_vm1 = vcmp.le.f32.partialorder %v1096_v41, 1.0 }
  0xea   : > { %v1385_v37 = vsel %vm483_vm8, 1.0, %v1244_v20  ;;  %v468_v44 = vpop.f32.mrf.mxu1  ;;  %v1413_v50 = vsel %vm492_vm1, 1.0, %v1244_v20 }
  0xeb   : > { %520 = vadd.xlane.f32.xlu1 %v1383_v36  ;;  %522 = vadd.xlane.f32.xlu0 %v1385_v37  ;;  %vm491_vm15 = vcmp.le.f32.partialorder %v468_v44, 1.0 }
  0xec   : > { %v1407_v47 = vsel %vm491_vm15, 1.0, %v1244_v20 }
  0xef   : > { %524 = vadd.xlane.f32.xlu1 %v1391_v40  ;;  %526 = vadd.xlane.f32.xlu0 %v1389_v39 }
  0xf3   : > { %528 = vadd.xlane.f32.xlu1 %v1397_v43  ;;  %530 = vadd.xlane.f32.xlu0 %v1395_v42 }
  0xf7   : > { %532 = vadd.xlane.f32.xlu1 %v1403_v46  ;;  %534 = vadd.xlane.f32.xlu0 %v1401_v45 }
  0xfb   : > { %536 = vadd.xlane.f32.xlu1 %v1409_v48  ;;  %538 = vadd.xlane.f32.xlu0 %v1407_v47 }
  0xff   : > { %540 = vadd.xlane.f32.xlu1 %v1413_v50 }
 0x168   : > { %v511_v51 = vpop.xlane.xlu0 %510 }
 0x169   : > { %v1032_v52 = vadd.f32 -1.0, %v511_v51 }
 0x16b   : > { %1148 = vrsqrt.f32 %v1032_v52  ;;  %vm580_vm2 = vcmp.gt.f32.partialorder %v1032_v52, 0.0 }
 0x16c   : > { %v513_v53 = vpop.xlane.xlu0 %512  ;;  %v515_v54 = vpop.xlane.xlu1 %514 }
 0x16d   : > { %v1033_v55 = vadd.f32 -1.0, %v513_v53  ;;  %v1034_v56 = vadd.f32 -1.0, %v515_v54  ;;  %v810_v54 = vsel %vm804_vm3, %v791_v28, 0.0 }
 0x16f   : > { %1150 = vrsqrt.f32 %v1033_v55  ;;  %vm581_vm4 = vcmp.gt.f32.partialorder %v1033_v55, 0.0  ;;  %vm582_vm5 = vcmp.gt.f32.partialorder %v1034_v56, 0.0  ;;  %v809_v55 = vadd.f32 %v808_v29, %v807_v25  ;;  %v272_v29 = vld [vmem:[%s1423_s12 + $0x48] sm:$0xff] }
 0x170   : > { %1152 = vrsqrt.f32 %v1034_v56  ;;  %v517_v57 = vpop.xlane.xlu1 %516  ;;  %v519_v58 = vpop.xlane.xlu0 %518  ;;  %v267_v56 = vld [vmem:[%s1423_s12 + $0x20] sm:$0xff] }
 0x171   : > { %v1035_v59 = vadd.f32 -1.0, %v517_v57  ;;  %v1416_v60 = vadd.f32 -1.0, %v519_v58 }
 0x173   : > { %1154 = vrsqrt.f32 %v1035_v59  ;;  %vm583_vm6 = vcmp.gt.f32.partialorder %v1035_v59, 0.0  ;;  %vm584_vm7 = vcmp.gt.f32.partialorder %v1416_v60, 0.0 }
 0x174   : > { %v521_v61 = vpop.xlane.xlu1 %520  ;;  %v523_v62 = vpop.xlane.xlu0 %522  ;;  %1156 = vrsqrt.f32 %v1416_v60  ;;  %v268_v60 = vld [vmem:[%s1423_s12 + $0x28] sm:$0xff] }
 0x175   : > { %v1426_v63 = vadd.f32 -1.0, %v521_v61  ;;  %v1431_v7 = vadd.f32 -1.0, %v523_v62  ;;  %v792_v62 = vmul.f32 %v267_v56, %v267_v56  ;;  %v793_v12 = vmul.f32 %v268_v60, %v268_v60 }
 0x177   : > { %1158 = vrsqrt.f32 %v1426_v63  ;;  %vm585_vm8 = vcmp.gt.f32.partialorder %v1426_v63, 0.0  ;;  %vm586_vm9 = vcmp.gt.f32.partialorder %v1431_v7, 0.0 }
 0x178   : > { %v1149_v2 = vpop.eup %1148  ;;  %v525_v3 = vpop.xlane.xlu1 %524  ;;  %1160 = vrsqrt.f32 %v1431_v7 }
 0x179   : > { %v612_v6 = vsel %vm580_vm2, %v1149_v2, 0.0  ;;  %v1433_v8 = vadd.f32 -1.0, %v525_v3  ;;  %v527_v9 = vpop.xlane.xlu0 %526 }
 0x17a   : > { %v631_v10 = vmul.f32 %v612_v6, %v263_v0  ;;  %v1442_v22 = vadd.f32 -1.0, %v527_v9  ;;  %v811_v9 = vadd.f32 %v810_v54, %v809_v55 }
 0x17b   : > { %1162 = vrsqrt.f32 %v1433_v8  ;;  %vm587_vm11 = vcmp.gt.f32.partialorder %v1433_v8, 0.0 }
 0x17c   : > { %v1151_v13 = vpop.eup %1150  ;;  %v529_v14 = vpop.xlane.xlu1 %528  ;;  %650 = vperm.xlu0 %1146, %v631_v10   ;;  %v846_v33 = vmul.f32 %v631_v10, %v631_v10  ;;  %vm588_vm12 = vcmp.gt.f32.partialorder %v1442_v22, 0.0 }
 0x17d   : > { %v1153_v17 = vpop.eup %1152  ;;  %v613_v18 = vsel %vm581_vm4, %v1151_v13, 0.0  ;;  %v1439_v19 = vadd.f32 -1.0, %v529_v14  ;;  %v531_v34 = vpop.xlane.xlu0 %530  ;;  %v812_v14 = vsel %vm804_vm3, %v792_v62, 0.0 }
 0x17e   : > { %v614_v20 = vsel %vm582_vm5, %v1153_v17, 0.0  ;;  %v632_v23 = vmul.f32 %v613_v18, %v264_v1  ;;  %v862_v58 = vsel %vm804_vm3, %v846_v33, 0.0  ;;  %v1459_v3 = vadd.f32 -1.0, %v531_v34 }
 0x17f   : > { %1164 = vrsqrt.f32 %v1439_v19  ;;  %v633_v41 = vmul.f32 %v614_v20, %v265_v11  ;;  %v794_v17 = vmul.f32 %v269_v15, %v269_v15  ;;  %v813_v28 = vadd.f32 %v812_v14, %v811_v9 }
 0x180   : > { %v1155_v30 = vpop.eup %1154  ;;  %v847_v35 = vmul.f32 %v632_v23, %v632_v23  ;;  %655 = vperm.xlu1 %1147, %v632_v23   ;;  %v533_v38 = vpop.xlane.xlu1 %532  ;;  %1166 = vrsqrt.f32 %v1442_v22  ;;  %vm589_vm10 = vcmp.gt.f32.partialorder %v1439_v19, 0.0  ;;  %v814_v34 = vsel %vm804_vm3, %v793_v12, 0.0  ;;  %v1500_v22 = vld [vmem:[%s1423_s12 + $0x68] sm:$0xff] }
 0x181   : > { %v615_v44 = vsel %vm583_vm6, %v1155_v30, 0.0  ;;  %v1447_v49 = vadd.f32 -1.0, %v533_v38  ;;  %v1157_v51 = vpop.eup %1156  ;;  %v848_v61 = vmul.f32 %v633_v41, %v633_v41  ;;  %v535_v4 = vpop.xlane.xlu0 %534  ;;  %v270_v38 = vld [vmem:[%s1423_s12 + $0x38] sm:$0xff]  ;;  %v816_v19 = vsel %vm804_vm3, %v794_v17, 0.0 }
 0x182   : > { %v863_v52 = vsel %vm804_vm3, %v847_v35, 0.0  ;;  %v634_v53 = vmul.f32 %v615_v44, %v266_v24  ;;  %v616_v0 = vsel %vm584_vm7, %v1157_v51, 0.0  ;;  %v1471_v25 = vadd.f32 -1.0, %v535_v4 }
 0x183   : > { %1168 = vrsqrt.f32 %v1447_v49  ;;  %v864_v1 = vadd.f32 %v863_v52, %v862_v58  ;;  %v865_v10 = vsel %vm804_vm3, %v848_v61, 0.0  ;;  %v635_v13 = vmul.f32 %v616_v0, %v267_v56  ;;  %v1488_v58 = vld [vmem:[%s1423_s12 + $0x58] sm:$0xff] }
 0x184   : > { %v1159_v57 = vpop.eup %1158  ;;  %665 = vperm.xlu1 %1147, %v634_v53   ;;  %v537_v59 = vpop.xlane.xlu1 %536  ;;  %v849_v5 = vmul.f32 %v634_v53, %v634_v53  ;;  %v795_v52 = vmul.f32 %v270_v38, %v270_v38  ;;  %v815_v7 = vadd.f32 %v814_v34, %v813_v28  ;;  %vm591_vm13 = vcmp.gt.f32.partialorder %v1447_v49, 0.0 }
 0x185   : > { %v1456_v2 = vadd.f32 -1.0, %v537_v59  ;;  %v617_v6 = vsel %vm585_vm8, %v1159_v57, 0.0  ;;  %v866_v63 = vadd.f32 %v865_v10, %v864_v1  ;;  %v1161_v18 = vpop.eup %1160  ;;  %v539_v33 = vpop.xlane.xlu0 %538  ;;  %v850_v35 = vmul.f32 %v635_v13, %v635_v13 }
 0x186   : > { %v867_v20 = vsel %vm804_vm3, %v849_v5, 0.0  ;;  %v636_v23 = vmul.f32 %v617_v6, %v268_v60  ;;  %v1485_v57 = vadd.f32 -1.0, %v539_v33  ;;  %v817_v49 = vadd.f32 %v816_v19, %v815_v7  ;;  %v271_v60 = vld [vmem:[%s1423_s12 + $0x40] sm:$0xff] }
 0x187   : > { %1170 = vrsqrt.f32 %v1456_v2  ;;  %v868_v51 = vadd.f32 %v867_v20, %v866_v63  ;;  %v869_v8 = vsel %vm804_vm3, %v850_v35, 0.0  ;;  %vm593_vm14 = vcmp.gt.f32.partialorder %v1456_v2, 0.0  ;;  %v1512_v2 = vld [vmem:[%s1423_s12 + $0x78] sm:$0xff] }
 0x188   : > { %660 = vperm.xlu1 %1147, %v633_v41   ;;  %v541_v11 = vpop.xlane.xlu1 %540  ;;  %1172 = vrsqrt.f32 %v1459_v3  ;;  %v1163_v24 = vpop.eup %1162  ;;  %v618_v41 = vsel %vm586_vm9, %v1161_v18, 0.0  ;;  %v851_v53 = vmul.f32 %v636_v23, %v636_v23  ;;  %v818_v10 = vsel %vm804_vm3, %v795_v52, 0.0 }
 0x189   : > { %v1466_v16 = vadd.f32 -1.0, %v541_v11  ;;  %v619_v56 = vsel %vm587_vm11, %v1163_v24, 0.0  ;;  %v637_v61 = vmul.f32 %v618_v41, %v269_v15  ;;  %v870_v0 = vadd.f32 %v869_v8, %v868_v51  ;;  %v273_v51 = vld [vmem:[%s1423_s12 + $0x50] sm:$0xff] }
 0x18a   : > { %v871_v1 = vsel %vm804_vm3, %v851_v53, 0.0  ;;  %v638_v4 = vmul.f32 %v619_v56, %v270_v38  ;;  %v796_v12 = vmul.f32 %v271_v60, %v271_v60  ;;  %v558_v20 = vadd.f32 %v1371_v26, %v1368_v21 }
 0x18b   : > { %1174 = vrsqrt.f32 %v1466_v16  ;;  %v852_v11 = vmul.f32 %v637_v61, %v637_v61  ;;  %v872_v14 = vadd.f32 %v871_v1, %v870_v0  ;;  %v819_v24 = vadd.f32 %v818_v10, %v817_v49  ;;  %v275_v0 = vld [vmem:[%s1423_s12 + $0x60] sm:$0xff] }
 0x18c   : > { %v1165_v30 = vpop.eup %1164  ;;  %675 = vperm.xlu1 %1147, %v636_v23   ;;  %1176 = vrsqrt.f32 %v1471_v25  ;;  %v853_v15 = vmul.f32 %v638_v4, %v638_v4  ;;  %v797_v23 = vmul.f32 %v272_v29, %v272_v29  ;;  %vm590_vm15 = vcmp.gt.f32.partialorder %v1459_v3, 0.0 }
 0x18d   : > { %v621_v44 = vsel %vm589_vm10, %v1165_v30, 0.0  ;;  %v1167_v55 = vpop.eup %1166  ;;  %1178 = vrsqrt.f32 %v1485_v57  ;;  %vm595_vm0 = vcmp.gt.f32.partialorder %v1466_v16, 0.0  ;;  %v873_v30 = vsel %vm804_vm3, %v852_v11, 0.0 }
 0x18e   : > { %v1481_v54 = vmul.f32 %v621_v44, %v272_v29  ;;  %v620_v6 = vsel %vm588_vm12, %v1167_v55, 0.0  ;;  %v820_v33 = vsel %vm804_vm3, %v796_v12, 0.0  ;;  %v559_v34 = vadd.f32 %v558_v20, %v1373_v27  ;;  %v277_v12 = vld [vmem:[%s1423_s12 + $0x70] sm:$0xff]  ;;  %s1182_s12 = scalar_lea.vmem %s919_s5, 16 }
 0x18f   : > { %v639_v17 = vmul.f32 %v620_v6, %v271_v60  ;;  %v874_v29 = vadd.f32 %v873_v30, %v872_v14  ;;  %v875_v38 = vsel %vm804_vm3, %v853_v15, 0.0  ;;  %v821_v16 = vadd.f32 %v820_v33, %v819_v24  ;;  %p1183_p11 = scmp.ne.s32.totalorder %s919_s5, %s1182_s12  ;;  %p1190_p1 = scmp.lt.s32.totalorder %s1188_s14, %s1182_s12 }
 0x190   : > { %v1169_v59 = vpop.eup %1168  ;;  %670 = vperm.xlu1 %1147, %v635_v13   ;;  %695 = vperm.xlu0 %1146, %v1481_v54   ;;  %vm592_vm1 = vcmp.gt.f32.partialorder %v1471_v25, 0.0  ;;  %v822_v53 = vsel %vm804_vm3, %v797_v23, 0.0  ;;  %v798_v19 = vmul.f32 %v273_v51, %v273_v51  ;;  %v560_v55 = vadd.f32 %v559_v34, %v1377_v31 }
 0x191   : > { %v623_v62 = vsel %vm591_vm13, %v1169_v59, 0.0  ;;  %v854_v44 = vmul.f32 %v639_v17, %v639_v17  ;;  %v876_v56 = vadd.f32 %v875_v38, %v874_v29  ;;  %v855_v7 = vmul.f32 %v1481_v54, %v1481_v54  ;;  %p1184_p12 = pnand %p1183_p11, %p1310_p5  ;;  %p1191_p2 = por %p1190_p1, %p1189_p0 }
 0x192   : > { %v1496_v5 = vmul.f32 %v623_v62, %v1488_v58  ;;  %v823_v62 = vadd.f32 %v822_v53, %v821_v16  ;;  %vm594_vm2 = vcmp.gt.f32.partialorder %v1485_v57, 0.0  ;;  %v799_v1 = vmul.f32 %v1488_v58, %v1488_v58 }
 0x193   : > { %v877_v59 = vsel %vm804_vm3, %v854_v44, 0.0  ;;  %v561_v6 = vadd.f32 %v560_v55, %v1379_v32  ;;  %v879_v54 = vsel %vm804_vm3, %v855_v7, 0.0  ;;  %v800_v14 = vmul.f32 %v275_v0, %v275_v0  ;;  %p1185_p13 = pneg %p1184_p12 }
 0x194   : > { %v1171_v9 = vpop.eup %1170  ;;  %685 = vperm.xlu1 %1147, %v638_v4   ;;  %705 = vperm.xlu0 %1146, %v1496_v5   ;;  %v824_v4 = vsel %vm804_vm3, %v798_v19, 0.0  ;;  %v878_v49 = vadd.f32 %v877_v59, %v876_v56  ;;  %v857_v15 = vmul.f32 %v1496_v5, %v1496_v5  ;;  %v801_v23 = vmul.f32 %v1500_v22, %v1500_v22 }
 0x195   : > { %v625_v13 = vsel %vm593_vm14, %v1171_v9, 0.0  ;;  %v1173_v18 = vpop.eup %1172  ;;  %v825_v11 = vadd.f32 %v824_v4, %v823_v62  ;;  %v562_v57 = vadd.f32 %v561_v6, %v1383_v36  ;;  %v828_v24 = vsel %vm804_vm3, %v800_v14, 0.0  ;;  %p1192_p3 = pnand %p1191_p2, %p1185_p13 }
 0x196   : > { %v1507_v63 = vmul.f32 %v625_v13, %v1500_v22  ;;  %v622_v3 = vsel %vm590_vm15, %v1173_v18, 0.0  ;;  %v826_v13 = vsel %vm804_vm3, %v799_v1, 0.0  ;;  %v880_v58 = vadd.f32 %v879_v54, %v878_v49 }
 0x197   : > { %v641_v8 = vmul.f32 %v622_v3, %v273_v51  ;;  %v827_v20 = vadd.f32 %v826_v13, %v825_v11  ;;  %v883_v33 = vsel %vm804_vm3, %v857_v15, 0.0  ;;  %v802_v29 = vmul.f32 %v277_v12, %v277_v12 }
 0x198   : > { %v1175_v28 = vpop.eup %1174  ;;  %715 = vperm.xlu0 %1146, %v1507_v63   ;;  %680 = vperm.xlu1 %1147, %v637_v61   ;;  %v830_v5 = vsel %vm804_vm3, %v801_v23, 0.0  ;;  %v859_v3 = vmul.f32 %v1507_v63, %v1507_v63  ;;  %v803_v51 = vmul.f32 %v1512_v2, %v1512_v2 }
 0x199   : > { %v627_v35 = vsel %vm595_vm0, %v1175_v28, 0.0  ;;  %v1177_v52 = vpop.eup %1176  ;;  %v856_v60 = vmul.f32 %v641_v8, %v641_v8  ;;  %v563_v28 = vadd.f32 %v562_v57, %v1385_v37 }
 0x19a   : > { %v1522_v41 = vmul.f32 %v627_v35, %v1512_v2  ;;  %v624_v61 = vsel %vm592_vm1, %v1177_v52, 0.0  ;;  %v1179_v25 = vpop.eup %1178  ;;  %v829_v35 = vadd.f32 %v828_v24, %v827_v20  ;;  %v832_v52 = vsel %vm804_vm3, %v802_v29, 0.0  ;;  %v509_v20 = vld [vmem:[%s245_s20] sm:$0x1] }
 0x19b   : > { %v643_v9 = vmul.f32 %v624_v61, %v275_v0  ;;  %v626_v10 = vsel %vm594_vm2, %v1179_v25, 0.0  ;;  %v564_v38 = vadd.f32 %v563_v28, %v1391_v40  ;;  %v887_v56 = vsel %vm804_vm3, %v859_v3, 0.0 }
 0x19c   : > { %725 = vperm.xlu0 %1146, %v1522_v41   ;;  %690 = vperm.xlu1 %1147, %v639_v17   ;;  %v881_v17 = vsel %vm804_vm3, %v856_v60, 0.0  ;;  %v645_v18 = vmul.f32 %v626_v10, %v277_v12  ;;  %v831_v16 = vadd.f32 %v830_v5, %v829_v35  ;;  %v834_v59 = vsel %vm804_vm3, %v803_v51, 0.0 }
 0x19d   : > { %v882_v30 = vadd.f32 %v881_v17, %v880_v58  ;;  %v858_v34 = vmul.f32 %v643_v9, %v643_v9  ;;  %v565_v53 = vadd.f32 %v564_v38, %v1389_v39  ;;  %v861_v61 = vmul.f32 %v1522_v41, %v1522_v41 }
 0x19e   : > { %v860_v55 = vmul.f32 %v645_v18, %v645_v18  ;;  %v833_v7 = vadd.f32 %v832_v52, %v831_v16  ;;  %v744_v58 = vlaneseq }
 0x19f   : > { %v884_v44 = vadd.f32 %v883_v33, %v882_v30  ;;  %v885_v22 = vsel %vm804_vm3, %v858_v34, 0.0  ;;  %v891_v1 = vsel %vm804_vm3, %v861_v61, 0.0 }
 0x1a0   : > { %700 = vperm.xlu1 %1147, %v641_v8   ;;  %v566_v8 = vadd.f32 %v565_v53, %v1397_v43  ;;  %v889_v62 = vsel %vm804_vm3, %v860_v55, 0.0  ;;  %v835_v2 = vadd.f32 %v834_v59, %v833_v7 }
 0x1a1   : > { %v886_v19 = vadd.f32 %v885_v22, %v884_v44 }
 0x1a2   : > { %v567_v0 = vadd.f32 %v566_v8, %v1395_v42 }
 0x1a3   : > { %v888_v63 = vadd.f32 %v887_v56, %v886_v19 }
 0x1a4   : > { %710 = vperm.xlu1 %1147, %v643_v9   ;;  %v568_v4 = vadd.f32 %v567_v0, %v1403_v46 }
 0x1a5   : > { %v890_v25 = vadd.f32 %v889_v62, %v888_v63 }
 0x1a6   : > { %v569_v49 = vadd.f32 %v568_v4, %v1401_v45 }
 0x1a7   : > { %v892_v6 = vadd.f32 %v891_v1, %v890_v25 }
 0x1a8   : > { %720 = vperm.xlu1 %1147, %v645_v18   ;;  %v570_v54 = vadd.f32 %v569_v49, %v1409_v48  ;;  %v745_v18 = vshrl.u32 %v744_v58, 7 }
 0x1aa   : > { %v571_v41 = vadd.f32 %v570_v54, %v1407_v47  ;;  %v746_v30 = vsub.s32 0, %v745_v18 }
 0x1ac   : > { %v572_v60 = vadd.f32 %v571_v41, %v1413_v50 }
 0x1ae   : > { %v573_v9 = vrot.slane %v572_v60, 4 }
 0x1b0   : > { %v574_v10 = vadd.f32 %v573_v9, %v572_v60 }
 0x1b2   : > { %v575_v11 = vrot.slane %v574_v10, 2 }
 0x1b4   : > { %v576_v12 = vadd.f32 %v575_v11, %v574_v10 }
 0x1b6   : > { %v577_v13 = vrot.slane %v576_v12, 1 }
 0x1b8   : > { %v578_v14 = vadd.f32 %v577_v13, %v576_v12 }
 0x1ba   : > { %v1048_v57 = vadd.f32 -1.0, %v578_v14 }
 0x1bb   : > { %836 = vadd.xlane.f32.xlu0 %v835_v2 }
 0x1bc   : > { %1180 = vrsqrt.f32 %v1048_v57  ;;  %vm628_vm3 = vcmp.gt.f32.partialorder %v1048_v57, 0.0 }
 0x1bf   : > { %893 = vadd.xlane.f32.xlu0 %v892_v6 }
 0x1c9   : > { %v1181_v15 = vpop.eup %1180 }
 0x1ca   : > { %v630_v23 = vsel %vm628_vm3, %v1181_v15, 0.0 }
 0x1cb   : > { %v647_v28 = vmul.f32 %v630_v23, %v509_v20 }
 0x1cd   : > { %v747_v29 = vrot.slane %v647_v28, %v746_v30 }
 0x1f7   : > { %v651_v33 = vpop.permute.xlu0 %650 }
 0x1f8   : > { %v728_v5 = vmul.f32 %v651_v33, %v1368_v21 }
 0x1fa   : > { %v748_v22 = vmul.f32 %v747_v29, %v728_v5 }
 0x1fb   : > { %v656_v17 = vpop.permute.xlu1 %655 }
 0x1fc   : > { %v729_v34 = vmul.f32 %v656_v17, %v1371_v26 }
 0x1fe   : > { %v749_v44 = vmul.f32 %v747_v29, %v729_v34 }
 0x1ff   : > { %v666_v24 = vpop.permute.xlu1 %665 }
 0x200   : > { %v764_v51 = vadd.f32 %v749_v44, %v748_v22  ;;  %v731_v52 = vmul.f32 %v666_v24, %v1377_v31 }
 0x202   : > { %v751_v56 = vmul.f32 %v747_v29, %v731_v52 }
 0x203   : > { %v661_v35 = vpop.permute.xlu1 %660 }
 0x204   : > { %v730_v38 = vmul.f32 %v661_v35, %v1373_v27 }
 0x206   : > { %v750_v16 = vmul.f32 %v747_v29, %v730_v38 }
 0x207   : > { %v676_v3 = vpop.permute.xlu1 %675 }
 0x208   : > { %v765_v19 = vadd.f32 %v764_v51, %v750_v16  ;;  %v733_v8 = vmul.f32 %v676_v3, %v1383_v36 }
 0x20a   : > { %v766_v21 = vadd.f32 %v765_v19, %v751_v56  ;;  %v753_v61 = vmul.f32 %v747_v29, %v733_v8 }
 0x20b   : > { %v671_v53 = vpop.permute.xlu1 %670  ;;  %v696_v26 = vpop.permute.xlu0 %695 }
 0x20c   : > { %v732_v55 = vmul.f32 %v671_v53, %v1379_v32  ;;  %v737_v32 = vmul.f32 %v696_v26, %v1397_v43 }
 0x20e   : > { %v752_v7 = vmul.f32 %v747_v29, %v732_v55  ;;  %v757_v9 = vmul.f32 %v747_v29, %v737_v32 }
 0x20f   : > { %v686_v59 = vpop.permute.xlu1 %685  ;;  %v706_v0 = vpop.permute.xlu0 %705 }
 0x210   : > { %v767_v63 = vadd.f32 %v766_v21, %v752_v7  ;;  %v735_v62 = vmul.f32 %v686_v59, %v1391_v40  ;;  %v739_v10 = vmul.f32 %v706_v0, %v1403_v46 }
 0x212   : > { %v768_v25 = vadd.f32 %v767_v63, %v753_v61  ;;  %v755_v4 = vmul.f32 %v747_v29, %v735_v62  ;;  %v759_v14 = vmul.f32 %v747_v29, %v739_v10 }
 0x213   : > { %v681_v27 = vpop.permute.xlu1 %680  ;;  %v716_v41 = vpop.permute.xlu0 %715 }
 0x214   : > { %v734_v2 = vmul.f32 %v681_v27, %v1385_v37  ;;  %v741_v43 = vmul.f32 %v716_v41, %v1409_v48 }
 0x216   : > { %v754_v31 = vmul.f32 %v747_v29, %v734_v2  ;;  %v761_v20 = vmul.f32 %v747_v29, %v741_v43 }
 0x217   : > { %v691_v1 = vpop.permute.xlu1 %690 }
 0x218   : > { %v769_v6 = vadd.f32 %v768_v25, %v754_v31  ;;  %v736_v49 = vmul.f32 %v691_v1, %v1389_v39  ;;  %v726_v39 = vpop.permute.xlu0 %725 }
 0x219   : > { %v743_v23 = vmul.f32 %v726_v39, %v1413_v50 }
 0x21a   : > { %v756_v54 = vmul.f32 %v747_v29, %v736_v49  ;;  %v770_v36 = vadd.f32 %v769_v6, %v755_v4 }
 0x21b   : > { %v701_v60 = vpop.permute.xlu1 %700  ;;  %v763_v30 = vmul.f32 %v747_v29, %v743_v23 }
 0x21c   : > { %v771_v40 = vadd.f32 %v770_v36, %v756_v54  ;;  %v738_v37 = vmul.f32 %v701_v60, %v1395_v42 }
 0x21e   : > { %v758_v11 = vmul.f32 %v747_v29, %v738_v37  ;;  %v772_v12 = vadd.f32 %v771_v40, %v757_v9 }
 0x21f   : > { %v711_v13 = vpop.permute.xlu1 %710 }
 0x220   : > { %v773_v57 = vadd.f32 %v772_v12, %v758_v11  ;;  %v740_v58 = vmul.f32 %v711_v13, %v1401_v45 }
 0x222   : > { %v760_v15 = vmul.f32 %v747_v29, %v740_v58  ;;  %v774_v17 = vadd.f32 %v773_v57, %v759_v14 }
 0x223   : > { %v721_v18 = vpop.permute.xlu1 %720 }
 0x224   : > { %v775_v46 = vadd.f32 %v774_v17, %v760_v15  ;;  %v742_v24 = vmul.f32 %v721_v18, %v1407_v47 }
 0x226   : > { %v762_v42 = vmul.f32 %v747_v29, %v742_v24  ;;  %v776_v28 = vadd.f32 %v775_v46, %v761_v20 }
 0x228   : > { %v777_v33 = vadd.f32 %v776_v28, %v762_v42 }
 0x22a   : > { %v778_v34 = vadd.f32 %v777_v33, %v763_v30 }
 0x22c   : > { %779 = vadd.xlane.f32.xlu1 %v778_v34 }
 0x244   : > { %v837_v48 = vpop.xlane.xlu0 %836 }
 0x245   : > { %v838_v5 = vrot.slane %v837_v48, 4 }
 0x247   : > { %v839_v38 = vadd.f32 %v838_v5, %v837_v48 }
 0x248   : > { %v894_v35 = vpop.xlane.xlu0 %893 }
 0x249   : > { %v895_v45 = vrot.slane %v894_v35, 4  ;;  %v840_v3 = vrot.slane %v839_v38, 2 }
 0x24b   : > { %v896_v44 = vadd.f32 %v895_v45, %v894_v35  ;;  %v841_v52 = vadd.f32 %v840_v3, %v839_v38 }
 0x24d   : > { %v897_v16 = vrot.slane %v896_v44, 2  ;;  %v842_v19 = vrot.slane %v841_v52, 1 }
 0x24f   : > { %v898_v47 = vadd.f32 %v897_v16, %v896_v44  ;;  %v843_v26 = vadd.f32 %v842_v19, %v841_v52 }
 0x251   : > { %v899_v56 = vrot.slane %v898_v47, 1 }
 0x253   : > { %v900_v59 = vadd.f32 %v899_v56, %v898_v47 }
 0x2b5   : > { %v780_v22 = vpop.xlane.xlu1 %779 }
 0x2b6   : > { %v781_v50 = vrot.slane %v780_v22, 4 }
 0x2b8   : > { %v782_v51 = vadd.f32 %v781_v50, %v780_v22 }
 0x2ba   : > { %v783_v53 = vrot.slane %v782_v51, 2 }
 0x2bc   : > { %v784_v29 = vadd.f32 %v783_v53, %v782_v51 }
 0x2be   : > { %v785_v55 = vrot.slane %v784_v29, 1 }
 0x2c0   : > { %v786_v7 = vadd.f32 %v785_v55, %v784_v29 }
 0x2c2   : > { %1099 = vpush %v786_v7 }
 0x2c3   : > { %1101 = vpush %v843_v26 }
 0x2c4   : > { %1103 = vpush %v900_v59 }
 0x2f3   : > { %s1100_s23 = spop %1099 }
 0x2f4   : > { %s1102_s27 = spop %1101 }
 0x2f5   : > { %s845_s29 = ssub.f32 %s1102_s27, %s1100_s23  ;;  %s1104_s6 = spop %1103 }
 0x2f7   : > { %s902_s7 = sadd.f32 %s1104_s6, %s845_s29 }
 0x2f9   : > { %v903_v8 = vstv %s902_s7 }
 0x2fa   : > { %904 = vst [vmem:[%s228_s30] sm:$0x1] %v903_v8 }
 0x2fb   : > { %1195 = shalt.err (!%p1192_p3)
}
 0x2fc   : > { %s1196_s20 = scalar_lea.hbm %s1597_s10, 16  ;;  %s1200_s27 = scalar_lea.hbm %s1636_s4, 32 }
 0x2fd   : > { %p1197_p4 = scmp.ne.s32.totalorder %s1597_s10, %s1196_s20  ;;  %p1201_p9 = scmp.lt.s32.totalorder %s1597_s10, %s1636_s4 }
 0x2fe   : > { %p1202_p10 = scmp.lt.s32.totalorder %s1200_s27, %s1196_s20 }
 0x2ff   : > { %p1198_p7 = pnand %p1197_p4, %p1310_p5 }
 0x300   : > { %p1203_p11 = por %p1202_p10, %p1201_p9 }
 0x301   : > { %p1199_p8 = pneg %p1198_p7 }
 0x303   : > { %p1204_p12 = pnand %p1203_p11, %p1199_p8 }
 0x305   : > { %1207 = shalt.err (!%p1204_p12)
}
 0x306   : > { %1105 = dma.vmem_to_hbm [thread:$0]  (%p1310_p5), %s919_s5, 16, %s1597_s10, %s906_s11  }
 0x307 PF: > { %p1111_p13 = scmp.ge.s32.totalorder %s1242_s18, 2  ;;  %s930_s30 = sand.u32 1, %s1230_s15  }
 0x308   : > { %s931_s6 = scalar_lea.sflag [#allocation3], %s930_s30 }
 0x309   : > { %p1108_p0 = pnand %p1111_p13, %p1314_p6 }
 0x30b   : > { %p1109_p1 = pneg %p1108_p0 }
 0x30d   : > { %1225 = dma.done.wait (%p1109_p1), %s931_s6, 16  }
 0x30e   : > { %1227 = vsyncadd (%p1109_p1), %s931_s6, 4294967280  ;;  %p14_p2 = scmp.ge.s32.totalorder %s1297_s21, 4   ;;  %s1639_s15 = smov %s1234_s16 }
 0x30f   : > { %s1640_s16 = smov %s1238_s17  ;;  %s1641_s17 = smov %s1308_s24 }
 0x310   : > { %s1642_s18 = smov %s1297_s21  ;;  %16 = sbr.rel (!%p14_p2) target bundleno = 3 (0x3), region = 80 }
 0x315   :  { %935 = vsyncpa [#allocation3], 1 }
 0x316   :  { %937 = vsyncpa [#allocation3 + $0x1], 1 }

</bundles_post_ra>
